<compile_context>
chip_gen: v7x
topology: tpu7x:2x2x1
jax: 0.10.0
libtpu: 0.0.40
codegen_flags: <defaults>
</compile_context>

<pallas_src>
import functools

import jax
import jax.numpy as jnp
from jax.experimental import pallas as pl
from jax.experimental.pallas import tpu as pltpu

LANE = 128      # lane width  (last dim)
SUBLANE = 8     # sublane width (second-to-last dim)


def _round_up(x, m):
    return ((x + m - 1) // m) * m


def mlp_kernel(x_ref, w1_ref, b1_ref, w2_ref, b2_ref, w3_ref, b3_ref, o_ref):
    """Fused forward for one batch tile: 3 MXU matmuls + 2 VPU ReLUs, f32 acc.

    Activations are cast to the weight dtype before each dot so bf16 weights
    hit the bf16 MXU rate (accumulation stays f32).  Only the real action_dim
    output columns are stored (masked vst); padded columns never reach HBM.
    """
    w_dtype = w1_ref.dtype
    x = x_ref[...].astype(w_dtype)
    # Hoist bias loads once per tile; rely on implicit (1, F) broadcast.
    b1 = b1_ref[...]
    b2 = b2_ref[...]
    b3 = b3_ref[...]

    h1 = jnp.dot(x, w1_ref[...], preferred_element_type=jnp.float32) + b1
    h1 = jnp.maximum(h1, 0.0).astype(w_dtype)

    h2 = jnp.dot(h1, w2_ref[...], preferred_element_type=jnp.float32) + b2
    h2 = jnp.maximum(h2, 0.0).astype(w_dtype)

    y = jnp.dot(h2, w3_ref[...], preferred_element_type=jnp.float32) + b3

    # Store only the real action_dim columns (out block == full output dim).
    o_ref[...] = y[:, : o_ref.shape[-1]].astype(o_ref.dtype)


def pad_params(params):
    """Zero-pad hidden/output feature dims up to multiples of 128 lanes.

    One-time cost at init.  Padded hidden units have zero weights AND zero
    biases, so ReLU keeps them at exactly 0 and they do not perturb the next
    layer.  Padded fc3 columns only exist in VMEM compute; the kernel never
    writes them to HBM.
    """
    w1, b1, w2, b2, w3, b3 = (params[k] for k in ("w1", "b1", "w2", "b2", "w3", "b3"))
    S, H = w1.shape
    A = w3.shape[1]
    Hp = _round_up(H, LANE)
    Ap = _round_up(A, LANE)

    def pad2(a, rows, cols):
        return jnp.pad(a, ((0, rows - a.shape[0]), (0, cols - a.shape[1])))

    padded = {
        "w1": pad2(w1, S, Hp), "b1": pad2(b1, 1, Hp),
        "w2": pad2(w2, Hp, Hp), "b2": pad2(b2, 1, Hp),
        "w3": pad2(w3, Hp, Ap), "b3": pad2(b3, 1, Ap),
    }
    return padded, A


def cast_params(params, dtype=jnp.bfloat16):
    """Optional: bf16 weights for v6e/v7x (bf16 MXU path, half the DMA volume).

    Biases stay f32 (added to the f32 accumulator).  The kernel casts the
    activations to the weight dtype at each dot, so the bf16 path actually
    engages.  Do NOT use int8 on v7x (no int MXU).
    """
    out = dict(params)
    for k in ("w1", "w2", "w3"):
        out[k] = out[k].astype(dtype)
    return out


@functools.partial(jax.jit, static_argnames=("action_dim", "block_batch"))
def mlp_forward(x, params, *, action_dim, block_batch=512):
    """x: [B, state_dim] float32. params: lane-padded dict from pad_params()."""
    w1, b1, w2, b2, w3, b3 = (params[k] for k in ("w1", "b1", "w2", "b2", "w3", "b3"))
    B, S = x.shape
    H = w1.shape[1]     # padded hidden  (multiple of 128)
    Ap = w3.shape[1]    # padded fc3 cols (multiple of 128) -- VMEM compute only

    # Batch tile: multiple of 8 sublanes, capped at block_batch (512 default;
    # keep <= 512 on v5e: two live TBx128 f32 intermediates spill vregs beyond
    # that).  When the batch spans more than one sublane group, cap the tile at
    # ceil(B/2) so the grid has >= 2 steps and the "parallel" axis shards
    # across both v7x TensorCores (no-op perf-wise on single-core v5e/v6e).
    TB = _round_up(min(block_batch, _round_up(B, SUBLANE)), SUBLANE)
    if B > SUBLANE:
        TB = min(TB, _round_up(pl.cdiv(B, 2), SUBLANE))
    Bp = _round_up(B, TB)
    if Bp != B:
        x = jnp.pad(x, ((0, Bp - B), (0, 0)))

    def resident(shape):
        # Constant block index => operand fetched once, stays VMEM-resident.
        # TODO(synk): pipeline_mode=pl.Buffered(1) would drop the redundant
        # second buffer for these residents (only matters for large hidden_dim
        # on v7x's smaller VMEM); omitted here to keep lowering conservative.
        return pl.BlockSpec(shape, lambda i: (0, 0))

    wbytes = sum(int(p.size) * p.dtype.itemsize for p in (w1, b1, w2, b2, w3, b3))
    cost = pl.CostEstimate(
        flops=2 * Bp * (S * H + H * H + H * Ap),
        transcendentals=0,
        bytes_accessed=int(Bp * S * x.dtype.itemsize)
        + int(wbytes)
        + int(Bp * action_dim * x.dtype.itemsize),
    )

    out = pl.pallas_call(
        mlp_kernel,
        out_shape=jax.ShapeDtypeStruct((Bp, action_dim), x.dtype),
        grid_spec=pl.GridSpec(
            grid=(Bp // TB,),
            in_specs=[
                pl.BlockSpec((TB, S), lambda i: (i, 0)),   # x: tiled over batch
                resident((S, H)), resident((1, H)),        # fc1
                resident((H, H)), resident((1, H)),        # fc2
                resident((H, Ap)), resident((1, Ap)),      # fc3
            ],
            # Block == full output dim -> lane-masked stores of only the real
            # action_dim columns; no padded-output HBM writeback.
            out_specs=pl.BlockSpec((TB, action_dim), lambda i: (i, 0)),
        ),
        compiler_params=pltpu.CompilerParams(
            dimension_semantics=("parallel",),   # megacore sharding on v7x
        ),
        cost_estimate=cost,
    )(x, w1, b1, w2, b2, w3, b3)

    # Only batch padding (if any) remains to strip.
    return out[:B] if Bp != B else out


def init_params(key, state_dim, action_dim, hidden_dim):
    """PyTorch nn.Linear default init: U(-1/sqrt(fan_in), 1/sqrt(fan_in))."""
    keys = jax.random.split(key, 6)

    def linear(kw, kb, fan_in, fan_out):
        bound = 1.0 / jnp.sqrt(jnp.float32(fan_in))
        w = jax.random.uniform(kw, (fan_in, fan_out), jnp.float32, -bound, bound)
        b = jax.random.uniform(kb, (1, fan_out), jnp.float32, -bound, bound)
        return w, b

    w1, b1 = linear(keys[0], keys[1], state_dim, hidden_dim)
    w2, b2 = linear(keys[2], keys[3], hidden_dim, hidden_dim)
    w3, b3 = linear(keys[4], keys[5], hidden_dim, action_dim)
    return {"w1": w1, "b1": b1, "w2": w2, "b2": b2, "w3": w3, "b3": b3}


if __name__ == "__main__":
    # Small shapes consistent with the module (hidden_dim default = 128).
    batch, state_dim, action_dim, hidden_dim = 2, 8, 4, 128

    key = jax.random.PRNGKey(0)
    k_params, k_x = jax.random.split(key)
    params = init_params(k_params, state_dim, action_dim, hidden_dim)
    x = jax.random.normal(k_x, (batch, state_dim), jnp.float32)

    # One-time lane padding of the feature dims.
    padded_params, _ = pad_params(params)
    # For v6e/v7x perf: padded_params = cast_params(padded_params)   (bf16
    # weights; the numerical check below would then need a looser tolerance.)

    out = mlp_forward(x, padded_params, action_dim=action_dim)
    jax.block_until_ready(out)

    # Reference in plain JAX with the original (unpadded, f32) parameters.
    h1 = jnp.maximum(x @ params["w1"] + params["b1"], 0.0)
    h2 = jnp.maximum(h1 @ params["w2"] + params["b2"], 0.0)
    ref = h2 @ params["w3"] + params["b3"]

    assert out.shape == (batch, action_dim)
    # Tolerance covers possible bf16-pass default matmul precision on the MXU.
    assert jnp.allclose(out, ref, atol=2e-3, rtol=2e-3)

    print("KERNEL_OK")
</pallas_src>

<mosaic_0001>
module attributes {stable_mosaic.version = 11 : i64} {
  func.func @mlp_kernel(%arg0: i32, %arg1: memref<8x8xf32, #tpu.memory_space<vmem>>, %arg2: memref<8x128xf32, #tpu.memory_space<vmem>>, %arg3: memref<1x128xf32, #tpu.memory_space<vmem>>, %arg4: memref<128x128xf32, #tpu.memory_space<vmem>>, %arg5: memref<1x128xf32, #tpu.memory_space<vmem>>, %arg6: memref<128x128xf32, #tpu.memory_space<vmem>>, %arg7: memref<1x128xf32, #tpu.memory_space<vmem>>, %arg8: memref<8x4xf32, #tpu.memory_space<vmem>>) attributes {dimension_semantics = [#tpu.dimension_semantics<parallel>], iteration_bounds = array<i64: 1>, scalar_prefetch = 0 : i64, scratch_operands = 0 : i64, tpu.core_type = #tpu.core_type<tc>, window_params = [{transform_indices = @transform_0, window_bounds = array<i64: 8, 8>}, {pipeline_mode = #tpu.pipeline_mode<synchronous>, transform_indices = @transform_1, window_bounds = array<i64: 8, 128>}, {pipeline_mode = #tpu.pipeline_mode<synchronous>, transform_indices = @transform_2, window_bounds = array<i64: 1, 128>}, {pipeline_mode = #tpu.pipeline_mode<synchronous>, transform_indices = @transform_3, window_bounds = array<i64: 128, 128>}, {pipeline_mode = #tpu.pipeline_mode<synchronous>, transform_indices = @transform_4, window_bounds = array<i64: 1, 128>}, {pipeline_mode = #tpu.pipeline_mode<synchronous>, transform_indices = @transform_5, window_bounds = array<i64: 128, 128>}, {pipeline_mode = #tpu.pipeline_mode<synchronous>, transform_indices = @transform_6, window_bounds = array<i64: 1, 128>}, {transform_indices = @transform_7, window_bounds = array<i64: 8, 4>}]} {
    %c0 = arith.constant 0 : index
    %c0_0 = arith.constant 0 : index
    %0 = vector.load %arg1[%c0, %c0_0] : memref<8x8xf32, #tpu.memory_space<vmem>>, vector<8x8xf32>
    %c0_1 = arith.constant 0 : index
    %c0_2 = arith.constant 0 : index
    %1 = vector.load %arg3[%c0_1, %c0_2] : memref<1x128xf32, #tpu.memory_space<vmem>>, vector<1x128xf32>
    %c0_3 = arith.constant 0 : index
    %c0_4 = arith.constant 0 : index
    %2 = vector.load %arg5[%c0_3, %c0_4] : memref<1x128xf32, #tpu.memory_space<vmem>>, vector<1x128xf32>
    %c0_5 = arith.constant 0 : index
    %c0_6 = arith.constant 0 : index
    %3 = vector.load %arg7[%c0_5, %c0_6] : memref<1x128xf32, #tpu.memory_space<vmem>>, vector<1x128xf32>
    %c0_7 = arith.constant 0 : index
    %c0_8 = arith.constant 0 : index
    %4 = vector.load %arg2[%c0_7, %c0_8] : memref<8x128xf32, #tpu.memory_space<vmem>>, vector<8x128xf32>
    %cst = arith.constant dense<0.000000e+00> : vector<8x128xf32>
    %5 = tpu.matmul %0, %4, %cst {dimension_numbers = #tpu.dot_dimension_numbers<[1], [0], [0], [1], [0, 0, 1, 1], [], []>} : vector<8x8xf32>, vector<8x128xf32>, vector<8x128xf32> -> vector<8x128xf32>
    %6 = vector.broadcast %1 : vector<1x128xf32> to vector<8x128xf32>
    %7 = arith.addf %5, %6 : vector<8x128xf32>
    %cst_9 = arith.constant 0.000000e+00 : f32
    %8 = vector.broadcast %cst_9 : f32 to vector<8x128xf32>
    %9 = arith.maximumf %7, %8 : vector<8x128xf32>
    %c0_10 = arith.constant 0 : index
    %c0_11 = arith.constant 0 : index
    %10 = vector.load %arg4[%c0_10, %c0_11] : memref<128x128xf32, #tpu.memory_space<vmem>>, vector<128x128xf32>
    %cst_12 = arith.constant dense<0.000000e+00> : vector<8x128xf32>
    %11 = tpu.matmul %9, %10, %cst_12 {dimension_numbers = #tpu.dot_dimension_numbers<[1], [0], [0], [1], [0, 0, 1, 1], [], []>} : vector<8x128xf32>, vector<128x128xf32>, vector<8x128xf32> -> vector<8x128xf32>
    %12 = vector.broadcast %2 : vector<1x128xf32> to vector<8x128xf32>
    %13 = arith.addf %11, %12 : vector<8x128xf32>
    %cst_13 = arith.constant 0.000000e+00 : f32
    %14 = vector.broadcast %cst_13 : f32 to vector<8x128xf32>
    %15 = arith.maximumf %13, %14 : vector<8x128xf32>
    %c0_14 = arith.constant 0 : index
    %c0_15 = arith.constant 0 : index
    %16 = vector.load %arg6[%c0_14, %c0_15] : memref<128x128xf32, #tpu.memory_space<vmem>>, vector<128x128xf32>
    %cst_16 = arith.constant dense<0.000000e+00> : vector<8x128xf32>
    %17 = tpu.matmul %15, %16, %cst_16 {dimension_numbers = #tpu.dot_dimension_numbers<[1], [0], [0], [1], [0, 0, 1, 1], [], []>} : vector<8x128xf32>, vector<128x128xf32>, vector<8x128xf32> -> vector<8x128xf32>
    %18 = vector.broadcast %3 : vector<1x128xf32> to vector<8x128xf32>
    %19 = arith.addf %17, %18 : vector<8x128xf32>
    %20 = vector.extract_strided_slice %19 {offsets = [0, 0], sizes = [8, 4], strides = [1, 1]} : vector<8x128xf32> to vector<8x4xf32>
    %c0_17 = arith.constant 0 : index
    %c0_18 = arith.constant 0 : index
    %21 = vector.load %arg8[%c0_17, %c0_18] : memref<8x4xf32, #tpu.memory_space<vmem>>, vector<8x4xf32>
    tpu.vector_store %arg8[%c0_17, %c0_18], %20 {strides = array<i32>} : memref<8x4xf32, #tpu.memory_space<vmem>>, vector<8x4xf32>,
    return
  }
  func.func @transform_0(%arg0: i32) -> (i32, i32) {
    %c0_i32 = arith.constant 0 : i32
    %c0_i32_0 = arith.constant 0 : i32
    return %arg0, %c0_i32 : i32, i32
  }
  func.func @transform_1(%arg0: i32) -> (i32, i32) {
    %c0_i32 = arith.constant 0 : i32
    %c0_i32_0 = arith.constant 0 : i32
    %c0_i32_1 = arith.constant 0 : i32
    return %c0_i32, %c0_i32_0 : i32, i32
  }
  func.func @transform_2(%arg0: i32) -> (i32, i32) {
    %c0_i32 = arith.constant 0 : i32
    %c0_i32_0 = arith.constant 0 : i32
    %c0_i32_1 = arith.constant 0 : i32
    return %c0_i32, %c0_i32_0 : i32, i32
  }
  func.func @transform_3(%arg0: i32) -> (i32, i32) {
    %c0_i32 = arith.constant 0 : i32
    %c0_i32_0 = arith.constant 0 : i32
    %c0_i32_1 = arith.constant 0 : i32
    return %c0_i32, %c0_i32_0 : i32, i32
  }
  func.func @transform_4(%arg0: i32) -> (i32, i32) {
    %c0_i32 = arith.constant 0 : i32
    %c0_i32_0 = arith.constant 0 : i32
    %c0_i32_1 = arith.constant 0 : i32
    return %c0_i32, %c0_i32_0 : i32, i32
  }
  func.func @transform_5(%arg0: i32) -> (i32, i32) {
    %c0_i32 = arith.constant 0 : i32
    %c0_i32_0 = arith.constant 0 : i32
    %c0_i32_1 = arith.constant 0 : i32
    return %c0_i32, %c0_i32_0 : i32, i32
  }
  func.func @transform_6(%arg0: i32) -> (i32, i32) {
    %c0_i32 = arith.constant 0 : i32
    %c0_i32_0 = arith.constant 0 : i32
    %c0_i32_1 = arith.constant 0 : i32
    return %c0_i32, %c0_i32_0 : i32, i32
  }
  func.func @transform_7(%arg0: i32) -> (i32, i32) {
    %c0_i32 = arith.constant 0 : i32
    %c0_i32_0 = arith.constant 0 : i32
    return %arg0, %c0_i32 : i32, i32
  }
}

</mosaic_0001>

<bundles_post_ra>
// kernel: mlp_forward.1
= control target key start
LH: loop header
LB: loop body
LE: loop exit
PB: predicated region body
PF: predicated region fallthrough
CT: control target
= control target key end

     0   :  { %12 = vsyncpa [#allocation3], 0  ;;  %s659_s0 = inlined_call_operand.vmem [shape: f32[8,8], index: 0, kind: input, shape index: {}]   ;;  %s660_s1 = inlined_call_operand.vmem [shape: f32[8,128], index: 1, kind: input, shape index: {}]   ;;  %s661_s2 = inlined_call_operand.vmem [shape: f32[1,128], index: 2, kind: input, shape index: {}]   ;;  %s662_s3 = inlined_call_operand.hbm [shape: f32[128,128], index: 3, kind: input, shape index: {}]   ;;  %s663_s4 = inlined_call_operand.vmem [shape: f32[1,128], index: 4, kind: input, shape index: {}]   ;;  %s664_s5 = inlined_call_operand.hbm [shape: f32[128,128], index: 5, kind: input, shape index: {}]   ;;  %s665_s6 = inlined_call_operand.vmem [shape: f32[1,128], index: 6, kind: input, shape index: {}]   ;;  %s666_s7 = inlined_call_operand.vmem [shape: f32[8,4], index: 7, kind: output, shape index: {}]  }
   0x1   :  { %13 = vsyncpa [#allocation5], 0  ;;  %s551_s24 = smov [#allocation2]   ;;  %s503_s28 = scalar_lea.hbm %s662_s3, 2048 }
   0x2   :  { %s25_s25 = sshll.u32 %s551_s24, 4  ;;  %p504_p0 = scmp.ne.s32.totalorder %s662_s3, %s503_s28  ;;  %s26_s25 = int_to_ptr.vmem [resolvable:$true] %s25_s25 }
   0x3   :  { %p507_p1 = scmp.lt.u32.totalorder %s503_s28, %s662_s3 }
   0x5   :  { %p509_p2 = pnand %p507_p1, %p504_p0 }
   0x7   :  { %512 = shalt.err (!%p509_p2)
}
   0x8   :  { %s513_s10 = scalar_lea.vmem %s26_s25, 2048  ;;  %p518_p4 = scmp.lt.s32.totalorder %s26_s25, %s26_s25 }
   0x9   :  { %p514_p3 = scmp.ne.s32.totalorder %s26_s25, %s513_s10  ;;  %p519_p5 = scmp.lt.s32.totalorder %s513_s10, %s513_s10 }
   0xb   :  { %p520_p6 = por %p519_p5, %p518_p4 }
   0xd   :  { %p521_p7 = pnand %p520_p6, %p514_p3 }
   0xf   :  { %524 = shalt.err (!%p521_p7)
}
  0x10   :  { %s552_s11 = smov 128   ;;  %s553_s12 = smov 8  }
  0x11   :  { %31 = dma.hbm_to_vmem [thread:$0]  %s662_s3, 2048, %s26_s25, [#allocation3], %s552_s11, %s552_s11, %s553_s12  }
  0x12   :  { %s554_s15 = smov [#allocation4]   ;;  %s525_s19 = scalar_lea.hbm %s664_s5, 2048 }
  0x13   :  { %s39_s16 = sshll.u32 %s554_s15, 4  ;;  %p526_p8 = scmp.ne.s32.totalorder %s664_s5, %s525_s19  ;;  %s40_s16 = int_to_ptr.vmem [resolvable:$true] %s39_s16 }
  0x14   :  { %p529_p9 = scmp.lt.u32.totalorder %s525_s19, %s664_s5 }
  0x16   :  { %p531_p10 = pnand %p529_p9, %p526_p8 }
  0x18   :  { %534 = shalt.err (!%p531_p10)
}
  0x19   :  { %s535_s24 = scalar_lea.vmem %s40_s16, 2048  ;;  %p540_p12 = scmp.lt.s32.totalorder %s40_s16, %s40_s16 }
  0x1a   :  { %p536_p11 = scmp.ne.s32.totalorder %s40_s16, %s535_s24  ;;  %p541_p13 = scmp.lt.s32.totalorder %s535_s24, %s535_s24 }
  0x1c   :  { %p542_p0 = por %p541_p13, %p540_p12 }
  0x1e   :  { %p543_p1 = pnand %p542_p0, %p536_p11 }
  0x20   :  { %546 = shalt.err (!%p543_p1)
}
  0x21   :  { %45 = dma.hbm_to_vmem [thread:$0]  %s664_s5, 2048, %s40_s16, [#allocation5], %s552_s11, %s552_s11, %s553_s12  }
  0x22   :  { %547 = dma.done.wait [#allocation3], 2048  }
  0x23   :  { %548 = vsyncadd [#allocation3], 4294965248 }
  0x24   :  { %549 = dma.done.wait [#allocation5], 2048  }
  0x25   :  { %550 = vsyncadd [#allocation5], 4294965248  ;;  %v555_v0 = vmov 0.0   ;;  %vm556_vm0 = vmmov 0   ;;  %v557_v1 = vmov 0.0|0.0   ;;  %vm65_vm1 = vcmask 64512  }
  0x26   :  { %373 = vmatprep.subr.mxu0 %v555_v0  ;;  %375 = vmatprep.mubr.msk.f32.mxu0 %vm556_vm0, %v555_v0  ;;  %v58_v2 = vld [vmem:[%s660_s1] sm:$0xff]  ;;  %v141_v5 = vld [vmem:[#allocation2 + $0x8] sm:$0xff]  ;;  %v142_v6 = vld [vmem:[#allocation2 + $0x10] sm:$0xff]  ;;  %vm325_vm2 = vcmask 31744  }
  0x27   :  { %448 = vmatprep.subr.bf16.mxu1 %v557_v1  ;;  %410 = vmatprep.mubr.msk.f32.mxu1 %vm556_vm0, %v555_v0  ;;  %v54_v3 = vld [vmem:[%s659_s0] sm:$0xff]  ;;  %v143_v7 = vld [vmem:[#allocation2 + $0x18] sm:$0xff]  ;;  %v145_v11 = vld [vmem:[#allocation2 + $0x28] sm:$0xff] }
  0x28   :  { %v140_v4 = vld [vmem:[#allocation2] sm:$0xff]  ;;  %374 = vmatpush3.msra.mxu0 %v58_v2  ;;  %v452_v9 = vpack.c.bf16 %v143_v7, %v142_v6  ;;  %v146_v13 = vld [vmem:[#allocation2 + $0x30] sm:$0xff]  ;;  %v147_v14 = vld [vmem:[#allocation2 + $0x38] sm:$0xff] }
  0x29   :  { %376 = vmatmul.mubr.msk.f32.vlgmr.msra.gmra.mrb[0].mxu0 %vm65_vm1, %v54_v3  ;;  %v449_v8 = vpack.c.bf16 %v141_v5, %v140_v4  ;;  %472 = vmatprep.subr.bf16.mxu0 %v557_v1  ;;  %v144_v10 = vld [vmem:[#allocation2 + $0x20] sm:$0xff]  ;;  %v458_v15 = vpack.c.bf16 %v147_v14, %v146_v13  ;;  %v149_v17 = vld [vmem:[#allocation2 + $0x48] sm:$0xff]  ;;  %v150_v19 = vld [vmem:[#allocation2 + $0x50] sm:$0xff] }
  0x2a   :  { %445 = vmatprep.mubr.msk.f32.mxu0 %vm556_vm0, %v555_v0  ;;  %v455_v12 = vpack.c.bf16 %v145_v11, %v144_v10  ;;  %v148_v16 = vld [vmem:[#allocation2 + $0x40] sm:$0xff]  ;;  %v151_v20 = vld [vmem:[#allocation2 + $0x58] sm:$0xff]  ;;  %v153_v23 = vld [vmem:[#allocation2 + $0x68] sm:$0xff] }
  0x2b   :  { %450 = vmatpush3.bf16.msra.mxu1 %v449_v8  ;;  %v461_v18 = vpack.c.bf16 %v149_v17, %v148_v16  ;;  %v464_v21 = vpack.c.bf16 %v151_v20, %v150_v19  ;;  %v152_v22 = vld [vmem:[#allocation2 + $0x60] sm:$0xff]  ;;  %v154_v25 = vld [vmem:[#allocation2 + $0x70] sm:$0xff]  ;;  %v155_v26 = vld [vmem:[#allocation2 + $0x78] sm:$0xff] }
  0x2c   :  { %451 = vmatprep.subr.bf16.mxu1 %v557_v1  ;;  %v467_v24 = vpack.c.bf16 %v153_v23, %v152_v22  ;;  %v470_v27 = vpack.c.bf16 %v155_v26, %v154_v25  ;;  %v233_v28 = vld [vmem:[#allocation4] sm:$0xff]  ;;  %v234_v29 = vld [vmem:[#allocation4 + $0x8] sm:$0xff]  ;;  %v235_v30 = vld [vmem:[#allocation4 + $0x10] sm:$0xff] }
  0x2d   :  { %v473_v31 = vpack.c.bf16 %v234_v29, %v233_v28  ;;  %v236_v32 = vld [vmem:[#allocation4 + $0x18] sm:$0xff]  ;;  %v237_v34 = vld [vmem:[#allocation4 + $0x20] sm:$0xff]  ;;  %v238_v35 = vld [vmem:[#allocation4 + $0x28] sm:$0xff] }
  0x2e   :  { %v476_v33 = vpack.c.bf16 %v236_v32, %v235_v30  ;;  %v479_v36 = vpack.c.bf16 %v238_v35, %v237_v34  ;;  %v239_v37 = vld [vmem:[#allocation4 + $0x30] sm:$0xff]  ;;  %v240_v38 = vld [vmem:[#allocation4 + $0x38] sm:$0xff]  ;;  %v241_v40 = vld [vmem:[#allocation4 + $0x40] sm:$0xff] }
  0x2f   :  { %453 = vmatpush3.bf16.msra.mxu1 %v452_v9  ;;  %474 = vmatpush3.bf16.msra.mxu0 %v473_v31  ;;  %v482_v39 = vpack.c.bf16 %v240_v38, %v239_v37  ;;  %v242_v41 = vld [vmem:[#allocation4 + $0x48] sm:$0xff]  ;;  %v243_v43 = vld [vmem:[#allocation4 + $0x50] sm:$0xff]  ;;  %v244_v44 = vld [vmem:[#allocation4 + $0x58] sm:$0xff] }
  0x30   :  { %454 = vmatprep.subr.bf16.mxu1 %v557_v1  ;;  %475 = vmatprep.subr.bf16.mxu0 %v557_v1  ;;  %v485_v42 = vpack.c.bf16 %v242_v41, %v241_v40  ;;  %v488_v45 = vpack.c.bf16 %v244_v44, %v243_v43  ;;  %v245_v46 = vld [vmem:[#allocation4 + $0x60] sm:$0xff]  ;;  %v246_v47 = vld [vmem:[#allocation4 + $0x68] sm:$0xff]  ;;  %v247_v54 = vld [vmem:[#allocation4 + $0x70] sm:$0xff] }
  0x31   :  { %v491_v48 = vpack.c.bf16 %v246_v47, %v245_v46  ;;  %v333_v49 = vld [vmem:[%s661_s2] ss:$0 sm:$0xff]  ;;  %v248_v55 = vld [vmem:[#allocation4 + $0x78] sm:$0xff] }
  0x32   :  { %v494_v56 = vpack.c.bf16 %v248_v55, %v247_v54  ;;  %v335_v57 = vld [vmem:[%s663_s4] ss:$0 sm:$0xff] }
  0x33   :  { %456 = vmatpush3.bf16.msra.mxu1 %v455_v12  ;;  %477 = vmatpush3.bf16.msra.mxu0 %v476_v33  ;;  %v336_v62 = vld [vmem:[%s665_s6] ss:$0 sm:$0xff] }
  0x34   :  { %457 = vmatprep.subr.bf16.mxu1 %v557_v1  ;;  %478 = vmatprep.subr.bf16.mxu0 %v557_v1 }
  0x37   :  { %459 = vmatpush3.bf16.msra.mxu1 %v458_v15  ;;  %480 = vmatpush3.bf16.msra.mxu0 %v479_v36 }
  0x38   :  { %460 = vmatprep.subr.bf16.mxu1 %v557_v1  ;;  %481 = vmatprep.subr.bf16.mxu0 %v557_v1 }
  0x3b   :  { %462 = vmatpush3.bf16.msra.mxu1 %v461_v18  ;;  %483 = vmatpush3.bf16.msra.mxu0 %v482_v39 }
  0x3c   :  { %463 = vmatprep.subr.bf16.mxu1 %v557_v1  ;;  %484 = vmatprep.subr.bf16.mxu0 %v557_v1 }
  0x3f   :  { %465 = vmatpush3.bf16.msra.mxu1 %v464_v21  ;;  %486 = vmatpush3.bf16.msra.mxu0 %v485_v42 }
  0x40   :  { %466 = vmatprep.subr.bf16.mxu1 %v557_v1  ;;  %487 = vmatprep.subr.bf16.mxu0 %v557_v1 }
  0x43   :  { %468 = vmatpush3.bf16.msra.mxu1 %v467_v24  ;;  %489 = vmatpush3.bf16.msra.mxu0 %v488_v45 }
  0x44   :  { %469 = vmatprep.subr.bf16.mxu1 %v557_v1  ;;  %490 = vmatprep.subr.bf16.mxu0 %v557_v1 }
  0x47   :  { %471 = vmatpush3.bf16.msra.mxu1 %v470_v27  ;;  %492 = vmatpush3.bf16.msra.mxu0 %v491_v48 }
  0x48   :  { %493 = vmatprep.subr.bf16.mxu0 %v557_v1 }
  0x4b   :  { %495 = vmatpush3.bf16.msra.mxu0 %v494_v56 }
  0xfc   :  { %v135_v50 = vpop.f32.mrb[0].mxu0 }
  0xfd   :  { %v136_v51 = vadd.f32 %v333_v49, %v135_v50  ;;  %v377_v52 = vpop.f32.mrb[1].mxu0 }
  0xff   :  { %v139_v53 = vmax.f32 %v136_v51, 0.0 }
 0x101   :  { %411 = vmatmul.mubr.f32.vlgmr.msra.gmra.mrb[0].mxu1 %v139_v53 }
 0x1d4   :  { %v228_v58 = vpop.f32.mrb[0].mxu1 }
 0x1d5   :  { %v229_v59 = vadd.f32 %v335_v57, %v228_v58  ;;  %v412_v60 = vpop.f32.mrb[1].mxu1 }
 0x1d7   :  { %v232_v61 = vmax.f32 %v229_v59, 0.0 }
 0x1d9   :  { %446 = vmatmul.mubr.f32.vlgmr.msra.gmra.mrb[2].mxu0 %v232_v61 }
 0x2ac   :  { %v321_v63 = vpop.f32.mrb[2].mxu0 }
 0x2ad   :  { %v322_v0 = vadd.f32 %v336_v62, %v321_v63  ;;  %v447_v1 = vpop.f32.mrb[3].mxu0 }
 0x2af   :  { %326 = vst.msk [vmem:[%s666_s7] sm:$0xff] %vm325_vm2, %v322_v0 }
 0x2b0   :  { %331 = vsyncpa [#allocation3], 1 }
 0x2b1   :  { %332 = vsyncpa [#allocation5], 1 }

</bundles_post_ra>
